<compile_context>
chip_gen: v6e
topology: v6e:2x2x1
jax: 0.10.0
libtpu: 0.0.40
codegen_flags: <defaults>
</compile_context>

<pallas_src>
import jax
import jax.numpy as jnp
from jax.experimental import pallas as pl
from jax.experimental.pallas import tpu as pltpu


def margin_mse_kernel(a_ref, p_ref, n_ref, ld_ref, o_ref):
    a = a_ref[...].astype(jnp.float32)
    d = p_ref[...].astype(jnp.float32) - n_ref[...].astype(jnp.float32)
    # fused: one multiply + ONE cross-lane reduce per row
    pred_diff = jnp.sum(a * d, axis=-1, keepdims=True)          # [tb, 1]
    err = pred_diff - ld_ref[...]                                # [tb, 1]
    o_ref[...] = err * err                                       # per-row squared error


def _round_up(x, m):
    return -(-x // m) * m


def _vmem_capacity_bytes():
    try:
        return int(pltpu.get_tpu_info().vmem_capacity_bytes)
    except Exception:
        return 64 * 2**20  # conservative default (v7x per-TC VMEM)


def margin_mse(anchor, positive, negative, pos_score, neg_score, *, tb=None):
    """anchor/positive/negative: [B, D]; pos_score/neg_score: [B]. Returns scalar f32."""
    B, D = anchor.shape
    itemsize = jnp.dtype(anchor.dtype).itemsize
    # sub-32-bit dtypes pack 2x/4x along sublanes -> use 16-row alignment
    row_align = 16 if itemsize < 4 else 8
    D_pad = _round_up(D, 128)

    # ---- generation-aware VMEM budgets
    vmem_cap = _vmem_capacity_bytes()
    small_vmem = vmem_cap <= 64 * 2**20                 # v7x-class chips
    budget = (24 * 2**20) if small_vmem else (80 * 2**20)
    limit_cap = (48 * 2**20) if small_vmem else (100 * 2**20)

    # ---- per-row VMEM accounting (lane-padded, double-buffered):
    #   inputs : 3 arrays x 2 bufs x D_pad x itemsize
    #   labels + out : 2 blocks x 2 bufs x 128 lanes x 4 B
    #   f32 elementwise temporaries : ~3 x D_pad x 4
    per_row = 2 * 3 * D_pad * itemsize + 2 * 2 * 128 * 4 + 3 * D_pad * 4

    if tb is None:
        tb = max(row_align, (budget // per_row // row_align) * row_align)
        tb = min(tb, 1024)
        # v7x megacore: ensure >= 2 grid tiles whenever B allows it
        half = _round_up(pl.cdiv(B, 2), row_align)
        tb = min(tb, half)

    # ---- block-shape legality: multiple of row_align sublanes, OR the full batch
    if tb >= B:
        tb = B                                           # single full-array block
    else:
        tb = max(row_align, (tb // row_align) * row_align)

    num_tiles = pl.cdiv(B, tb)                           # partial last block is masked

    labels_diff = (pos_score - neg_score).reshape(B, 1).astype(jnp.float32)

    # ---- scoped VMEM limit: actual need + headroom, clamped per generation
    needed = tb * per_row
    vmem_limit = int(min(max(needed + 8 * 2**20, 32 * 2**20), limit_cap))
    vmem_limit = int(max(vmem_limit, needed))            # never below actual need

    per_row_sq_err = pl.pallas_call(
        margin_mse_kernel,
        out_shape=jax.ShapeDtypeStruct((B, 1), jnp.float32),
        grid_spec=pltpu.PrefetchScalarGridSpec(
            num_scalar_prefetch=0,
            grid=(num_tiles,),
            in_specs=[
                pl.BlockSpec((tb, D), lambda i: (i, 0)),   # anchor
                pl.BlockSpec((tb, D), lambda i: (i, 0)),   # positive
                pl.BlockSpec((tb, D), lambda i: (i, 0)),   # negative
                pl.BlockSpec((tb, 1), lambda i: (i, 0)),   # labels_diff
            ],
            out_specs=pl.BlockSpec((tb, 1), lambda i: (i, 0)),
        ),
        compiler_params=pltpu.CompilerParams(
            dimension_semantics=("parallel",),   # independent tiles -> megacore on v7x
            vmem_limit_bytes=vmem_limit,
        ),
    )(anchor, positive, negative, labels_diff)

    # final mean over the TRUE batch size
    return jnp.sum(per_row_sq_err) / jnp.float32(B)


def margin_mse_ref(anchor, positive, negative, pos_score, neg_score):
    pos = jnp.sum(anchor.astype(jnp.float32) * positive.astype(jnp.float32), axis=-1)
    neg = jnp.sum(anchor.astype(jnp.float32) * negative.astype(jnp.float32), axis=-1)
    pred_diff = pos - neg
    labels_diff = pos_score.astype(jnp.float32) - neg_score.astype(jnp.float32)
    return jnp.mean((pred_diff - labels_diff) ** 2)


if __name__ == "__main__":
    # MarginMSE has no learned parameters; scoring_function resolved to 'dot'.
    # TODO(synk): 'maxsim' scoring (late-interaction max over a token axis) not implemented.
    B, D = 8, 32
    key = jax.random.PRNGKey(0)
    k1, k2, k3, k4, k5 = jax.random.split(key, 5)

    anchor = jax.random.normal(k1, (B, D), dtype=jnp.float32)
    positive = jax.random.normal(k2, (B, D), dtype=jnp.float32)
    negative = jax.random.normal(k3, (B, D), dtype=jnp.float32)
    pos_score = jax.random.normal(k4, (B,), dtype=jnp.float32)
    neg_score = jax.random.normal(k5, (B,), dtype=jnp.float32)

    loss = margin_mse(anchor, positive, negative, pos_score, neg_score)
    loss = jax.block_until_ready(loss)
    ref = margin_mse_ref(anchor, positive, negative, pos_score, neg_score)
    assert jnp.allclose(loss, ref, rtol=1e-5, atol=1e-5), (loss, ref)

    # Non-divisible batch (partial last block, no padding copies) + small tb to force >1 tile.
    B2, D2 = 37, 256
    j1, j2, j3, j4, j5 = jax.random.split(jax.random.PRNGKey(1), 5)
    a2 = jax.random.normal(j1, (B2, D2), dtype=jnp.float32)
    p2 = jax.random.normal(j2, (B2, D2), dtype=jnp.float32)
    n2 = jax.random.normal(j3, (B2, D2), dtype=jnp.float32)
    ps2 = jax.random.normal(j4, (B2,), dtype=jnp.float32)
    ns2 = jax.random.normal(j5, (B2,), dtype=jnp.float32)
    loss2 = jax.block_until_ready(margin_mse(a2, p2, n2, ps2, ns2, tb=16))
    ref2 = margin_mse_ref(a2, p2, n2, ps2, ns2)
    assert jnp.allclose(loss2, ref2, rtol=1e-4, atol=1e-4), (loss2, ref2)

    # bf16 inputs (exercises the 16-row alignment / upcast path).
    B3, D3 = 24, 128
    m1, m2, m3, m4, m5 = jax.random.split(jax.random.PRNGKey(2), 5)
    a3 = jax.random.normal(m1, (B3, D3), dtype=jnp.float32).astype(jnp.bfloat16)
    p3 = jax.random.normal(m2, (B3, D3), dtype=jnp.float32).astype(jnp.bfloat16)
    n3 = jax.random.normal(m3, (B3, D3), dtype=jnp.float32).astype(jnp.bfloat16)
    ps3 = jax.random.normal(m4, (B3,), dtype=jnp.float32)
    ns3 = jax.random.normal(m5, (B3,), dtype=jnp.float32)
    loss3 = jax.block_until_ready(margin_mse(a3, p3, n3, ps3, ns3))
    ref3 = margin_mse_ref(a3, p3, n3, ps3, ns3)
    assert jnp.allclose(loss3, ref3, rtol=1e-3, atol=1e-3), (loss3, ref3)

    print("KERNEL_OK")
</pallas_src>

<mosaic_0001>
module attributes {stable_mosaic.version = 11 : i64} {
  func.func @margin_mse_kernel(%arg0: i32, %arg1: memref<8x32xf32, #tpu.memory_space<vmem>>, %arg2: memref<8x32xf32, #tpu.memory_space<vmem>>, %arg3: memref<8x32xf32, #tpu.memory_space<vmem>>, %arg4: memref<8x1xf32, #tpu.memory_space<vmem>>, %arg5: memref<8x1xf32, #tpu.memory_space<vmem>>) attributes {dimension_semantics = [#tpu.dimension_semantics<parallel>], iteration_bounds = array<i64: 1>, scalar_prefetch = 0 : i64, scratch_operands = 0 : i64, tpu.core_type = #tpu.core_type<tc>, window_params = [{transform_indices = @transform_0, window_bounds = array<i64: 8, 32>}, {transform_indices = @transform_1, window_bounds = array<i64: 8, 32>}, {transform_indices = @transform_2, window_bounds = array<i64: 8, 32>}, {transform_indices = @transform_3, window_bounds = array<i64: 8, 1>}, {transform_indices = @transform_4, window_bounds = array<i64: 8, 1>}]} {
    %c0 = arith.constant 0 : index
    %c0_0 = arith.constant 0 : index
    %0 = vector.load %arg1[%c0, %c0_0] : memref<8x32xf32, #tpu.memory_space<vmem>>, vector<8x32xf32>
    %c0_1 = arith.constant 0 : index
    %c0_2 = arith.constant 0 : index
    %1 = vector.load %arg2[%c0_1, %c0_2] : memref<8x32xf32, #tpu.memory_space<vmem>>, vector<8x32xf32>
    %c0_3 = arith.constant 0 : index
    %c0_4 = arith.constant 0 : index
    %2 = vector.load %arg3[%c0_3, %c0_4] : memref<8x32xf32, #tpu.memory_space<vmem>>, vector<8x32xf32>
    %3 = arith.subf %1, %2 : vector<8x32xf32>
    %4 = arith.mulf %0, %3 : vector<8x32xf32>
    %cst = arith.constant dense<0.000000e+00> : vector<8xf32>
    %5 = vector.multi_reduction <add>, %4, %cst [1] : vector<8x32xf32> to vector<8xf32>
    %6 = vector.shape_cast %5 : vector<8xf32> to vector<8x1xf32>
    %c0_5 = arith.constant 0 : index
    %c0_6 = arith.constant 0 : index
    %7 = vector.load %arg4[%c0_5, %c0_6] : memref<8x1xf32, #tpu.memory_space<vmem>>, vector<8x1xf32>
    %8 = arith.subf %6, %7 : vector<8x1xf32>
    %9 = arith.mulf %8, %8 : vector<8x1xf32>
    %c0_7 = arith.constant 0 : index
    %c0_8 = arith.constant 0 : index
    %10 = vector.load %arg5[%c0_7, %c0_8] : memref<8x1xf32, #tpu.memory_space<vmem>>, vector<8x1xf32>
    tpu.vector_store %arg5[%c0_7, %c0_8], %9 {strides = array<i32>} : memref<8x1xf32, #tpu.memory_space<vmem>>, vector<8x1xf32>,
    return
  }
  func.func @transform_0(%arg0: i32) -> (i32, i32) {
    %c0_i32 = arith.constant 0 : i32
    %c0_i32_0 = arith.constant 0 : i32
    return %arg0, %c0_i32 : i32, i32
  }
  func.func @transform_1(%arg0: i32) -> (i32, i32) {
    %c0_i32 = arith.constant 0 : i32
    %c0_i32_0 = arith.constant 0 : i32
    return %arg0, %c0_i32 : i32, i32
  }
  func.func @transform_2(%arg0: i32) -> (i32, i32) {
    %c0_i32 = arith.constant 0 : i32
    %c0_i32_0 = arith.constant 0 : i32
    return %arg0, %c0_i32 : i32, i32
  }
  func.func @transform_3(%arg0: i32) -> (i32, i32) {
    %c0_i32 = arith.constant 0 : i32
    %c0_i32_0 = arith.constant 0 : i32
    return %arg0, %c0_i32 : i32, i32
  }
  func.func @transform_4(%arg0: i32) -> (i32, i32) {
    %c0_i32 = arith.constant 0 : i32
    %c0_i32_0 = arith.constant 0 : i32
    return %arg0, %c0_i32 : i32, i32
  }
}

</mosaic_0001>

<bundles_post_ra>
// kernel: tpu_custom_call.1
= control target key start
LH: loop header
LB: loop body
LE: loop exit
PB: predicated region body
PF: predicated region fallthrough
CT: control target
= control target key end

     0   :  { %9 = vsyncpa [#allocation3], 0  ;;  %s149_s0 = inlined_call_operand.vmem [shape: f32[8,32], index: 0, kind: input, shape index: {}]   ;;  %s150_s1 = inlined_call_operand.hbm [shape: f32[8,32], index: 1, kind: input, shape index: {}]   ;;  %s151_s2 = inlined_call_operand.hbm [shape: f32[8,32], index: 2, kind: input, shape index: {}]   ;;  %s152_s3 = inlined_call_operand.vmem [shape: f32[8,1], index: 3, kind: input, shape index: {}]   ;;  %s153_s4 = inlined_call_operand.vmem [shape: f32[8,1], index: 4, kind: output, shape index: {}]  }
   0x1   :  { %10 = vsyncpa [#allocation5], 0  ;;  %s107_s15 = smov [#allocation2]   ;;  %s108_s17 = smov [#allocation4]  }
   0x2   :  { %s19_s16 = sshll.u32 %s107_s15, 4  ;;  %s29_s18 = sshll.u32 %s108_s17, 4  ;;  %s20_s16 = int_to_ptr.vmem [resolvable:$true] %s19_s16  ;;  %s30_s18 = int_to_ptr.vmem [resolvable:$true] %s29_s18 }
   0x3   :  { %s71_s19 = scalar_lea.vmem %s20_s16, 128  ;;  %p76_p1 = scmp.lt.s32.totalorder %s20_s16, %s20_s16 }
   0x4   :  { %p72_p0 = scmp.ne.s32.totalorder %s20_s16, %s71_s19  ;;  %p77_p2 = scmp.lt.s32.totalorder %s71_s19, %s71_s19 }
   0x6   :  { %p78_p3 = por %p77_p2, %p76_p1 }
   0x8   :  { %p79_p4 = pnand %p78_p3, %p72_p0 }
   0xa   :  { %82 = shalt.err (!%p79_p4)
}
   0xb   :  { %22 = dma.hbm_to_vmem [thread:$0]  %s150_s1, 128, %s20_s16, [#allocation3]  }
   0xc   :  { %s91_s22 = scalar_lea.vmem %s30_s18, 128  ;;  %p96_p6 = scmp.lt.s32.totalorder %s30_s18, %s30_s18 }
   0xd   :  { %p92_p5 = scmp.ne.s32.totalorder %s30_s18, %s91_s22  ;;  %p97_p7 = scmp.lt.s32.totalorder %s91_s22, %s91_s22 }
   0xf   :  { %p98_p8 = por %p97_p7, %p96_p6 }
  0x11   :  { %p99_p9 = pnand %p98_p8, %p92_p5 }
  0x13   :  { %102 = shalt.err (!%p99_p9)
}
  0x14   :  { %32 = dma.hbm_to_vmem [thread:$0]  %s151_s2, 128, %s30_s18, [#allocation5]  }
  0x15   :  { %103 = dma.done.wait [#allocation3], 128  }
  0x16   :  { %104 = vsyncadd [#allocation3], 4294967168 }
  0x17   :  { %105 = dma.done.wait [#allocation5], 128  }
  0x18   :  { %106 = vsyncadd [#allocation5], 4294967168  ;;  %v41_v0 = vld [vmem:[%s149_s0] sm:$0xff]  ;;  %v43_v2 = vld [vmem:[#allocation4] sm:$0xff]  ;;  %vm46_vm0 = vcmask 261120   ;;  %vm53_vm1 = vcmask 7168  }
  0x19   :  { %v42_v1 = vld [vmem:[#allocation2] sm:$0xff] }
  0x1a   :  { %v44_v3 = vsub.f32 %v42_v1, %v43_v2  ;;  %v50_v6 = vld [vmem:[%s152_s3] sm:$0xff] }
  0x1c   :  { %v45_v4 = vmul.f32 %v44_v3, %v41_v0 }
  0x1e   :  { %v47_v5 = vsel %vm46_vm0, %v45_v4, 0.0 }
  0x1f   :  { %48 = vadd.xlane.f32.xlu0 %v47_v5 }
  0xa8   :  { %v49_v7 = vpop.xlane.xlu0 %48 }
  0xa9   :  { %v51_v8 = vsub.f32 %v49_v7, %v50_v6 }
  0xab   :  { %v52_v9 = vmul.f32 %v51_v8, %v51_v8 }
  0xad   :  { %54 = vst.msk [vmem:[%s153_s4] sm:$0xff] %vm53_vm1, %v52_v9 }
  0xae   :  { %59 = vsyncpa [#allocation3], 1 }
  0xaf   :  { %60 = vsyncpa [#allocation5], 1 }

</bundles_post_ra>
